<compile_context>
chip_gen: v7x
topology: tpu7x:2x2x1
jax: 0.10.0
libtpu: 0.0.40
codegen_flags: <defaults>
</compile_context>

<pallas_src>
import functools

import numpy as np
import jax
import jax.numpy as jnp
from jax import lax
from jax.experimental import pallas as pl
from jax.experimental.pallas import tpu as pltpu


def _logit_kernel(idx_ref, w_ref, bias_ref, out_ref, *, feature_tokens):
    # idx_ref : (P, b_tile) int32 VMEM  -- global vocab ids, batch on lanes,
    #                                      positions ordered [feature, token]
    # w_ref   : (8, V_pad)  f32  VMEM  -- row 0 = concatenated tables, rows 1..7 = 0
    # bias_ref: (1,)        f32  SMEM
    # out_ref : (1, b_tile) f32  VMEM  -- lane-dense output row
    v_pad = w_ref.shape[1]
    b_tile = out_ref.shape[1]

    idx = idx_ref[...]                                            # (P, b_tile)
    iota_v = lax.broadcasted_iota(jnp.int32, (v_pad, b_tile), 0)  # vocab id per sublane

    # Scaled one-hot accumulator A[v, b] = sum_p (1/T_f(p)) * [idx[p, b] == v].
    acc = jnp.zeros((v_pad, b_tile), jnp.float32)
    p = 0
    for t_f in feature_tokens:           # static python loop: features config is static
        inv_t = 1.0 / float(t_f)         # compile-time constant, folded into the select
        for _ in range(t_f):
            match = idx[p:p + 1, :] == iota_v         # (v_pad, b_tile), sublane broadcast
            acc = acc + jnp.where(match, inv_t, 0.0)
            p += 1

    # Single MXU contraction over the vocab axis; row 0 of the result is the answer,
    # already in the lane-dense (1, b_tile) orientation (no transpose needed).
    res = jnp.dot(w_ref[...], acc, preferred_element_type=jnp.float32)  # (8, b_tile)
    out_ref[...] = res[0:1, :] + bias_ref[0]


def logistic_layer_pallas(idx_t, w_mat, bias, feature_tokens, *, b_tile=128):
    """idx_t: (P, B) int32 global ids (batch on lanes); w_mat: (8, V_pad) f32;
    bias: (1,) f32.  Returns (B,) f32."""
    P, B = idx_t.shape
    v_pad = w_mat.shape[1]
    b_pad = ((B + b_tile - 1) // b_tile) * b_tile
    if b_pad != B:   # pad the batch (lane) axis; padded columns are sliced off below
        idx_t = jnp.pad(idx_t, ((0, 0), (0, b_pad - B)))
    grid = (b_pad // b_tile,)

    kernel = functools.partial(_logit_kernel, feature_tokens=tuple(feature_tokens))
    out = pl.pallas_call(
        kernel,
        out_shape=jax.ShapeDtypeStruct((1, b_pad), jnp.float32),
        grid_spec=pltpu.PrefetchScalarGridSpec(
            num_scalar_prefetch=0,
            grid=grid,
            in_specs=[
                pl.BlockSpec((P, b_tile), lambda i: (0, i)),        # idx: batch tiled on lanes
                pl.BlockSpec((8, v_pad), lambda i: (0, 0)),         # W: one lane-dense slab
                pl.BlockSpec(memory_space=pltpu.MemorySpace.SMEM),  # bias scalar
            ],
            out_specs=pl.BlockSpec((1, b_tile), lambda i: (0, i)),  # lane-dense stores
        ),
        compiler_params=pltpu.CompilerParams(
            dimension_semantics=("parallel",)),  # batch axis can feed both v7x TensorCores
    )(idx_t, w_mat, bias)
    return out[0, :B]


def build_features():
    # mimics the torch `features` config: vocab list + optional shared embedding
    # ("tokens" only drives synthetic input generation here).
    return {
        "user_id":   {"vocab": list(range(50)), "shared_embed_name": None,        "tokens": 1},
        "item_tags": {"vocab": list(range(30)), "shared_embed_name": None,        "tokens": 5},
        "hist_tags": {"vocab": list(range(30)), "shared_embed_name": "item_tags", "tokens": 3},
    }


def build_params(features, key):
    owners = [n for n, f in features.items() if f["shared_embed_name"] is None]
    offsets, tables = {}, {}
    cur = 0
    for n in owners:
        v = len(features[n]["vocab"])
        key, sub = jax.random.split(key)
        tables[n] = jax.random.normal(sub, (v, 1), jnp.float32) * 1e-4  # init.normal_(std=1e-4)
        offsets[n] = cur
        cur += v
    v_pad = max(128, ((cur + 127) // 128) * 128)   # lane-aligned vocab axis
    # W as an (8, V_pad) lane-dense slab: row 0 holds the concatenated tables,
    # rows 1..7 are zero.  This keeps the MXU LHS sublane-aligned and avoids the
    # old (V_pad, 1) layout whose width-1 lane dim is padded 128x in VMEM/DMA.
    w_row = jnp.zeros((v_pad,), jnp.float32)
    for n in owners:
        w_row = w_row.at[offsets[n]:offsets[n] + tables[n].shape[0]].set(tables[n][:, 0])
    w_mat = jnp.zeros((8, v_pad), jnp.float32).at[0].set(w_row)
    feature_tokens = tuple(f["tokens"] for f in features.values())   # static per-feature T_f
    bias = jnp.zeros((1,), jnp.float32)            # init.zeros_(bias)
    return tables, offsets, w_mat, feature_tokens, bias


def reference(features, tables, inputs, bias):
    parts = []
    for n, f in features.items():
        owner = f["shared_embed_name"] or n
        emb = tables[owner][inputs[n]]             # (B, T_f, 1)
        parts.append(jnp.mean(emb, axis=1))        # (B, 1)
    return jnp.sum(jnp.concatenate(parts, axis=-1), axis=-1) + bias   # (B,)


if __name__ == "__main__":
    B = 256                         # 2 parallel batch tiles of 128 -> even grid for v7x
    features = build_features()
    key = jax.random.PRNGKey(0)
    tables, offsets, w_mat, feature_tokens, bias = build_params(features, key)

    # deterministic synthetic inputs: kwargs[name] has shape (B, T_f), int ids into owner vocab
    inputs = {}
    for n, f in features.items():
        owner = f["shared_embed_name"] or n
        key, sub = jax.random.split(key)
        inputs[n] = jax.random.randint(
            sub, (B, f["tokens"]), 0, len(features[owner]["vocab"]), dtype=jnp.int32)

    # glue: globalize ids into the concatenated table, positions ordered [feature, token],
    # and transpose so the batch is the lane axis: (P, B).
    idx_global = jnp.concatenate(
        [inputs[n] + offsets[f["shared_embed_name"] or n] for n, f in features.items()],
        axis=-1).astype(jnp.int32)                 # (B, P)
    idx_t = idx_global.T                           # (P, B)

    out = logistic_layer_pallas(idx_t, w_mat, bias, feature_tokens, b_tile=128)
    out = jax.block_until_ready(out)

    ref = jax.block_until_ready(reference(features, tables, inputs, bias))
    np.testing.assert_allclose(np.asarray(out), np.asarray(ref), rtol=1e-5, atol=1e-7)
    print("KERNEL_OK")
</pallas_src>

<mosaic_0001>
module attributes {stable_mosaic.version = 11 : i64} {
  func.func @_logit_kernel(%arg0: i32, %arg1: memref<9x128xi32, #tpu.memory_space<vmem>>, %arg2: memref<8x128xf32, #tpu.memory_space<vmem>>, %arg3: memref<1xf32, #tpu.memory_space<smem>>, %arg4: memref<1x128xf32, #tpu.memory_space<vmem>>) attributes {dimension_semantics = [#tpu.dimension_semantics<parallel>], iteration_bounds = array<i64: 2>, scalar_prefetch = 0 : i64, scratch_operands = 0 : i64, tpu.core_type = #tpu.core_type<tc>, window_params = [{transform_indices = @transform_0, window_bounds = array<i64: 9, 128>}, {pipeline_mode = #tpu.pipeline_mode<synchronous>, transform_indices = @transform_1, window_bounds = array<i64: 8, 128>}, {transform_indices = @transform_2, window_bounds = array<i64: 1>}, {transform_indices = @transform_3, window_bounds = array<i64: 1, 128>}]} {
    %c0 = arith.constant 0 : index
    %c0_0 = arith.constant 0 : index
    %0 = vector.load %arg1[%c0, %c0_0] : memref<9x128xi32, #tpu.memory_space<vmem>>, vector<9x128xi32>
    %1 = tpu.iota {dimensions = array<i32: 0>} : vector<128x128xi32>
    %cst = arith.constant 0.000000e+00 : f32
    %2 = vector.broadcast %cst : f32 to vector<128x128xf32>
    %3 = vector.extract_strided_slice %0 {offsets = [0, 0], sizes = [1, 128], strides = [1, 1]} : vector<9x128xi32> to vector<1x128xi32>
    %4 = vector.broadcast %3 : vector<1x128xi32> to vector<128x128xi32>
    %5 = arith.cmpi eq, %4, %1 : vector<128x128xi32>
    %cst_1 = arith.constant 1.000000e+00 : f32
    %cst_2 = arith.constant 0.000000e+00 : f32
    %6 = vector.broadcast %cst_1 : f32 to vector<128x128xf32>
    %7 = vector.broadcast %cst_2 : f32 to vector<128x128xf32>
    %8 = arith.select %5, %6, %7 : vector<128x128xi1>, vector<128x128xf32>
    %9 = arith.addf %2, %8 : vector<128x128xf32>
    %10 = vector.extract_strided_slice %0 {offsets = [1, 0], sizes = [1, 128], strides = [1, 1]} : vector<9x128xi32> to vector<1x128xi32>
    %11 = vector.broadcast %10 : vector<1x128xi32> to vector<128x128xi32>
    %12 = arith.cmpi eq, %11, %1 : vector<128x128xi32>
    %cst_3 = arith.constant 2.000000e-01 : f32
    %cst_4 = arith.constant 0.000000e+00 : f32
    %13 = vector.broadcast %cst_3 : f32 to vector<128x128xf32>
    %14 = vector.broadcast %cst_4 : f32 to vector<128x128xf32>
    %15 = arith.select %12, %13, %14 : vector<128x128xi1>, vector<128x128xf32>
    %16 = arith.addf %9, %15 : vector<128x128xf32>
    %17 = vector.extract_strided_slice %0 {offsets = [2, 0], sizes = [1, 128], strides = [1, 1]} : vector<9x128xi32> to vector<1x128xi32>
    %18 = vector.broadcast %17 : vector<1x128xi32> to vector<128x128xi32>
    %19 = arith.cmpi eq, %18, %1 : vector<128x128xi32>
    %cst_5 = arith.constant 2.000000e-01 : f32
    %cst_6 = arith.constant 0.000000e+00 : f32
    %20 = vector.broadcast %cst_5 : f32 to vector<128x128xf32>
    %21 = vector.broadcast %cst_6 : f32 to vector<128x128xf32>
    %22 = arith.select %19, %20, %21 : vector<128x128xi1>, vector<128x128xf32>
    %23 = arith.addf %16, %22 : vector<128x128xf32>
    %24 = vector.extract_strided_slice %0 {offsets = [3, 0], sizes = [1, 128], strides = [1, 1]} : vector<9x128xi32> to vector<1x128xi32>
    %25 = vector.broadcast %24 : vector<1x128xi32> to vector<128x128xi32>
    %26 = arith.cmpi eq, %25, %1 : vector<128x128xi32>
    %cst_7 = arith.constant 2.000000e-01 : f32
    %cst_8 = arith.constant 0.000000e+00 : f32
    %27 = vector.broadcast %cst_7 : f32 to vector<128x128xf32>
    %28 = vector.broadcast %cst_8 : f32 to vector<128x128xf32>
    %29 = arith.select %26, %27, %28 : vector<128x128xi1>, vector<128x128xf32>
    %30 = arith.addf %23, %29 : vector<128x128xf32>
    %31 = vector.extract_strided_slice %0 {offsets = [4, 0], sizes = [1, 128], strides = [1, 1]} : vector<9x128xi32> to vector<1x128xi32>
    %32 = vector.broadcast %31 : vector<1x128xi32> to vector<128x128xi32>
    %33 = arith.cmpi eq, %32, %1 : vector<128x128xi32>
    %cst_9 = arith.constant 2.000000e-01 : f32
    %cst_10 = arith.constant 0.000000e+00 : f32
    %34 = vector.broadcast %cst_9 : f32 to vector<128x128xf32>
    %35 = vector.broadcast %cst_10 : f32 to vector<128x128xf32>
    %36 = arith.select %33, %34, %35 : vector<128x128xi1>, vector<128x128xf32>
    %37 = arith.addf %30, %36 : vector<128x128xf32>
    %38 = vector.extract_strided_slice %0 {offsets = [5, 0], sizes = [1, 128], strides = [1, 1]} : vector<9x128xi32> to vector<1x128xi32>
    %39 = vector.broadcast %38 : vector<1x128xi32> to vector<128x128xi32>
    %40 = arith.cmpi eq, %39, %1 : vector<128x128xi32>
    %cst_11 = arith.constant 2.000000e-01 : f32
    %cst_12 = arith.constant 0.000000e+00 : f32
    %41 = vector.broadcast %cst_11 : f32 to vector<128x128xf32>
    %42 = vector.broadcast %cst_12 : f32 to vector<128x128xf32>
    %43 = arith.select %40, %41, %42 : vector<128x128xi1>, vector<128x128xf32>
    %44 = arith.addf %37, %43 : vector<128x128xf32>
    %45 = vector.extract_strided_slice %0 {offsets = [6, 0], sizes = [1, 128], strides = [1, 1]} : vector<9x128xi32> to vector<1x128xi32>
    %46 = vector.broadcast %45 : vector<1x128xi32> to vector<128x128xi32>
    %47 = arith.cmpi eq, %46, %1 : vector<128x128xi32>
    %cst_13 = arith.constant 0.333333343 : f32
    %cst_14 = arith.constant 0.000000e+00 : f32
    %48 = vector.broadcast %cst_13 : f32 to vector<128x128xf32>
    %49 = vector.broadcast %cst_14 : f32 to vector<128x128xf32>
    %50 = arith.select %47, %48, %49 : vector<128x128xi1>, vector<128x128xf32>
    %51 = arith.addf %44, %50 : vector<128x128xf32>
    %52 = vector.extract_strided_slice %0 {offsets = [7, 0], sizes = [1, 128], strides = [1, 1]} : vector<9x128xi32> to vector<1x128xi32>
    %53 = vector.broadcast %52 : vector<1x128xi32> to vector<128x128xi32>
    %54 = arith.cmpi eq, %53, %1 : vector<128x128xi32>
    %cst_15 = arith.constant 0.333333343 : f32
    %cst_16 = arith.constant 0.000000e+00 : f32
    %55 = vector.broadcast %cst_15 : f32 to vector<128x128xf32>
    %56 = vector.broadcast %cst_16 : f32 to vector<128x128xf32>
    %57 = arith.select %54, %55, %56 : vector<128x128xi1>, vector<128x128xf32>
    %58 = arith.addf %51, %57 : vector<128x128xf32>
    %59 = vector.extract_strided_slice %0 {offsets = [8, 0], sizes = [1, 128], strides = [1, 1]} : vector<9x128xi32> to vector<1x128xi32>
    %60 = vector.broadcast %59 : vector<1x128xi32> to vector<128x128xi32>
    %61 = arith.cmpi eq, %60, %1 : vector<128x128xi32>
    %cst_17 = arith.constant 0.333333343 : f32
    %cst_18 = arith.constant 0.000000e+00 : f32
    %62 = vector.broadcast %cst_17 : f32 to vector<128x128xf32>
    %63 = vector.broadcast %cst_18 : f32 to vector<128x128xf32>
    %64 = arith.select %61, %62, %63 : vector<128x128xi1>, vector<128x128xf32>
    %65 = arith.addf %58, %64 : vector<128x128xf32>
    %c0_19 = arith.constant 0 : index
    %c0_20 = arith.constant 0 : index
    %66 = vector.load %arg2[%c0_19, %c0_20] : memref<8x128xf32, #tpu.memory_space<vmem>>, vector<8x128xf32>
    %cst_21 = arith.constant dense<0.000000e+00> : vector<8x128xf32>
    %67 = tpu.matmul %66, %65, %cst_21 {dimension_numbers = #tpu.dot_dimension_numbers<[1], [0], [0], [1], [0, 0, 1, 1], [], []>} : vector<8x128xf32>, vector<128x128xf32>, vector<8x128xf32> -> vector<8x128xf32>
    %68 = vector.extract_strided_slice %67 {offsets = [0, 0], sizes = [1, 128], strides = [1, 1]} : vector<8x128xf32> to vector<1x128xf32>
    %c0_22 = arith.constant 0 : index
    %69 = memref.load %arg3[%c0_22] : memref<1xf32, #tpu.memory_space<smem>>
    %70 = vector.broadcast %69 : f32 to vector<1x128xf32>
    %71 = arith.addf %68, %70 : vector<1x128xf32>
    %c0_23 = arith.constant 0 : index
    %c0_24 = arith.constant 0 : index
    %72 = vector.load %arg4[%c0_23, %c0_24] : memref<1x128xf32, #tpu.memory_space<vmem>>, vector<1x128xf32>
    tpu.vector_store %arg4[%c0_23, %c0_24], %71 {strides = array<i32>} : memref<1x128xf32, #tpu.memory_space<vmem>>, vector<1x128xf32>,
    return
  }
  func.func @transform_0(%arg0: i32) -> (i32, i32) {
    %c0_i32 = arith.constant 0 : i32
    %c0_i32_0 = arith.constant 0 : i32
    return %c0_i32, %arg0 : i32, i32
  }
  func.func @transform_1(%arg0: i32) -> (i32, i32) {
    %c0_i32 = arith.constant 0 : i32
    %c0_i32_0 = arith.constant 0 : i32
    %c0_i32_1 = arith.constant 0 : i32
    return %c0_i32, %c0_i32_0 : i32, i32
  }
  func.func @transform_2(%arg0: i32) -> i32 {
    %c0_i32 = arith.constant 0 : i32
    %c0_i32_0 = arith.constant 0 : i32
    return %c0_i32 : i32
  }
  func.func @transform_3(%arg0: i32) -> (i32, i32) {
    %c0_i32 = arith.constant 0 : i32
    %c0_i32_0 = arith.constant 0 : i32
    return %c0_i32, %arg0 : i32, i32
  }
}

</mosaic_0001>

<bundles_post_ra>
// kernel: tpu_custom_call.1
= control target key start
LH: loop header
LB: loop body
LE: loop exit
PB: predicated region body
PF: predicated region fallthrough
CT: control target
= control target key end

     0   :  { %s1804_s0 = inlined_call_operand.hbm [shape: s32[9,256], index: 0, kind: input, shape index: {}]   ;;  %s1805_s1 = inlined_call_operand.hbm [shape: f32[8,128], index: 1, kind: input, shape index: {}]   ;;  %s1806_s2 = inlined_call_operand.<no memory space> [shape: f32[1], index: 2, kind: input, shape index: {}]   ;;  %s1807_s3 = inlined_call_operand.hbm [shape: f32[1,256], index: 3, kind: output, shape index: {}]  }
   0x1   :  { %8 = sst [smem:[#allocation2]] %s1806_s2 }
   0x2   :  { %9 = vsyncpa [#allocation4], 0 }
   0x3   :  { %11 = vsyncpa [#allocation4 + $0x1], 0 }
   0x4   :  { %12 = vsyncpa [#allocation7], 0 }
   0x5   :  { %13 = vsyncpa [#allocation5], 0 }
   0x6   :  { %15 = vsyncpa [#allocation5 + $0x1], 0  ;;  %s1166_s14 = smov 0   ;;  %s1168_s15 = smov 0  }
   0x7   :  { %s1170_s16 = smov 0   ;;  %s1172_s17 = smov 0  }
   0x8 LB: > { %s1187_s2 = sadd.s32 4294967295, %s1132_s17   ;;  %s852_s18 = sadd.s32 4294967294, %s1132_s17   ;;  %s1132_s17 = sphi %s1172_s17, %s1832_s17   ;;  %s1128_s16 = sphi %s1170_s16, %s1831_s16   ;;  %s1124_s15 = sphi %s1168_s15, %s1830_s15   ;;  %s1120_s14 = sphi %s1166_s14, %s1829_s14  }
   0x9   : > { %s1191_s19 = sadd.s32 1, %s1132_s17   ;;  %s28_s20 = sadd.s32 1, %s1128_s16 }
   0xa   : > { %s25_s21 = ssub.s32 %s1132_s17, %s1191_s19  ;;  %p35_p0 = scmp.ne.s32.totalorder %s1128_s16, %s1124_s15 }
   0xb   : > { %p26_p1 = scmp.eq.s32.totalorder %s25_s21, 0  ;;  %p36_p2 = scmp.eq.s32.totalorder %s1132_s17, 0 }
   0xc   : > { %p41_p3 = scmp.ne.s32.totalorder %s1124_s15, %s1120_s14  ;;  %p1808_p4 = scmp.eq.s32.totalorder %s1187_s2, 0 }
   0xd   : > { %s1203_s22 = scalar_select %p26_p1, %s1128_s16, %s28_s20  }
   0xe   : > { %p1205_p5 = por %p36_p2, %p35_p0  ;;  %p1211_p6 = por %p1808_p4, %p41_p3 }
   0xf   : > { %p107_p7 = scmp.eq.s32.totalorder %s1187_s2, 1  ;;  %p113_p8 = scmp.eq.s32.totalorder %s852_s18, 1 }
  0x10   : > { %s1814_s24 = scalar_select %p1211_p6, 1, 0 }
  0x11   : > { %p853_p9 = scmp.ge.s32.totalorder %s1132_s17, 1  ;;  %p120_p10 = scmp.lt.s32.totalorder %s1132_s17, 3 }
  0x12   : > { %p1218_p11 = por %p107_p7, %p35_p0  ;;  %p1222_p12 = por %p113_p8, %p41_p3 }
  0x13   : > { %p1226_p13 = pnand %p853_p9, %p120_p10  ;;  %s1134_s28 = smov [#allocation6]  }
  0x14   : > { %s1815_s25 = scalar_select %p1218_p11, 1, 0 }
  0x15   : > { %s1816_s26 = scalar_select %p1222_p12, 1, 0 }
  0x16   : > { %s1817_s27 = scalar_select %p1226_p13, 1, 0 }
  0x17   : > { %p949_p2 = pneg %p1226_p13  ;;  %s133_s29 = sshll.u32 %s1134_s28, 4  ;;  %s134_s29 = int_to_ptr.vmem [resolvable:$true] %s133_s29 }
  0x18   : > { %p962_p4 = scmp.lt.s32.totalorder %s1132_s17, 2  ;;  %p1818_p0 = scmp.eq.s32.totalorder %s1187_s2, 0 }
  0x19   : > { %s147_s4 = sand.u32 1, %s1128_s16   ;;  %s1004_s9 = scalar_lea.hbm %s1805_s1, 128 }
  0x1a   : > { %p1236_p7 = pnand %p949_p2, %p1818_p0  ;;  %p1243_p3 = pnand %p962_p4, %p1205_p5 }
  0x1b   : > { %s856_s6 = sshll.u32 %s147_s4, 4  ;;  %p1005_p8 = scmp.ne.s32.totalorder %s1805_s1, %s1004_s9 }
  0x1c   : > { %s1820_s5 = scalar_select %p1243_p3, 1, 0 }
  0x1d   : > { %p1006_p9 = pneg %p1236_p7  ;;  %p1011_p4 = scmp.lt.u32.totalorder %s1004_s9, %s1805_s1 }
  0x1f   : > { %p1007_p10 = pnand %p1006_p9, %p1005_p8 }
  0x21   : > { %p1008_p2 = pneg %p1007_p10 }
  0x23   : > { %p1013_p5 = pnand %p1011_p4, %p1008_p2 }
  0x25   : > { %1016 = shalt.err (!%p1013_p5)
}
  0x26   : > { %s1017_s18 = scalar_lea.vmem %s134_s29, 128  ;;  %p1025_p11 = scmp.lt.s32.totalorder %s134_s29, %s134_s29 }
  0x27   : > { %p1018_p0 = scmp.ne.s32.totalorder %s134_s29, %s1017_s18  ;;  %p1026_p6 = scmp.lt.s32.totalorder %s1017_s18, %s1017_s18 }
  0x29   : > { %p1020_p1 = pnand %p1018_p0, %p1006_p9  ;;  %p1027_p13 = por %p1026_p6, %p1025_p11 }
  0x2b   : > { %p1021_p12 = pneg %p1020_p1 }
  0x2d   : > { %p1028_p3 = pnand %p1027_p13, %p1021_p12 }
  0x2f   : > { %1031 = shalt.err (!%p1028_p3)
}
  0x30   : > { %952 = dma.hbm_to_vmem [thread:$0]  (!%p1236_p7), %s1805_s1, 128, %s134_s29, [#allocation7]  }
  0x31   : > { %s857_s23 = sshll.u32 %s1132_s17, 7  ;;  %s151_s28 = scalar_lea.vmem [#allocation3], %s856_s6 }
  0x32   : > { %s157_s7 = sshll.u32 %s151_s28, 4  ;;  %s1267_s10 = scalar_lea.hbm %s1804_s0, %s857_s23  ;;  %s1269_s7 = int_to_ptr.vmem [resolvable:$true] %s157_s7 }
  0x33   : > { %s1271_s30 = scalar_lea.sflag [#allocation4], %s147_s4  ;;  %s1032_s11 = scalar_lea.hbm %s1267_s10, 256 }
  0x34   : > { %p1033_p6 = scmp.ne.s32.totalorder %s1267_s10, %s1032_s11  ;;  %p1821_p11 = scmp.ne.s32.totalorder %s1820_s5, 0 }
  0x35   : > { %s1037_s12 = scalar_lea.hbm %s1804_s0, 512  ;;  %p1038_p7 = scmp.lt.u32.totalorder %s1267_s10, %s1804_s0 }
  0x36   : > { %p1034_p12 = pneg %p1821_p11  ;;  %p1039_p3 = scmp.lt.u32.totalorder %s1037_s12, %s1032_s11 }
  0x37   : > { %p1041_p9 = scmp.lt.u32.totalorder %s1032_s11, %s1267_s10 }
  0x38   : > { %p1035_p13 = pnand %p1034_p12, %p1033_p6  ;;  %p1040_p8 = por %p1039_p3, %p1038_p7 }
  0x3a   : > { %p1036_p1 = pneg %p1035_p13  ;;  %p1042_p10 = por %p1041_p9, %p1040_p8 }
  0x3c   : > { %p1043_p2 = pnand %p1042_p10, %p1036_p1 }
  0x3e   : > { %1046 = shalt.err (!%p1043_p2)
}
  0x3f   : > { %s1047_s4 = scalar_lea.vmem %s1269_s7, 256  ;;  %s1135_s20 = smov [#allocation3]  }
  0x40   : > { %p1048_p4 = scmp.ne.s32.totalorder %s1269_s7, %s1047_s4  ;;  %s1052_s21 = sshll.u32 %s1135_s20, 4  ;;  %s1053_s21 = int_to_ptr.vmem [resolvable:$false] %s1052_s21 }
  0x41   : > { %s1054_s23 = scalar_lea.vmem %s1053_s21, 512  ;;  %p1055_p6 = scmp.lt.s32.totalorder %s1269_s7, %s1053_s21 }
  0x42   : > { %p1050_p5 = pnand %p1048_p4, %p1034_p12  ;;  %p1056_p13 = scmp.lt.s32.totalorder %s1054_s23, %s1047_s4 }
  0x44   : > { %p1051_p0 = pneg %p1050_p5  ;;  %p1057_p7 = por %p1056_p13, %p1055_p6 }
  0x46   : > { %p1058_p3 = pnand %p1057_p7, %p1051_p0 }
  0x48   : > { %1061 = shalt.err (!%p1058_p3)
}
  0x49   : > { %s1136_s28 = smov 256   ;;  %s1137_s8 = smov 128  }
  0x4a   : > { %s1138_s9 = smov 8   ;;  %p1822_p12 = scmp.ne.s32.totalorder %s1817_s27, 0 }
  0x4b   : > { %956 = dma.hbm_to_vmem [thread:$0]  (!%p1821_p11), %s1267_s10, 256, %s1269_s7, %s1271_s30, %s1136_s28, %s1137_s8, %s1138_s9  }
  0x4c   : > { %169 = sbr.rel (%p1822_p12) target bundleno = 443 (0x1bb), region = 32  ;;  %s1302_s11 = sand.u32 (!%p1822_p12), 1, %s1124_s15  }
  0x4d   : > { %s859_s29 = sshll.u32 (!%p1822_p12), %s1302_s11, 4  ;;  %s172_s6 = scalar_lea.sflag (!%p1822_p12), [#allocation4], %s1302_s11 }
  0x4e   : > { %s1306_s12 = scalar_lea.vmem (!%p1822_p12), [#allocation3], %s859_s29  ;;  %p1823_p1 = scmp.ne.s32.totalorder (!%p1822_p12), %s1814_s24, 0 }
  0x53   : > { %1107 = dma.done.wait (%p1823_p1), %s172_s6, 256  }
  0x54   : > { %1109 = vsyncadd (%p1823_p1), %s172_s6, 4294967040  ;;  %p1824_p11 = scmp.eq.s32.totalorder %s1187_s2, 0 }
  0x56   : > { %1111 = dma.done.wait (%p1824_p11), [#allocation7], 128   ;;  %p1825_p8 = pmov %p1824_p11 }
  0x57   : > { %v203_v0 = vlaneseq  ;;  %v1139_v1 = vmov 0.0|0.0   ;;  %vm1140_vm0 = vmmov 0   ;;  %v1141_v2 = vmov 0.0   ;;  %v201_v15 = vld [vmem:[%s1306_s12] sm:$0xff]  ;;  %v1399_v40 = vld [vmem:[%s1306_s12 + $0x8] ss:$0 sm:$0xff] }
  0x58   : > { %1113 = vsyncadd (%p1825_p8), [#allocation7], 4294967168  ;;  %917 = vmatprep.subr.bf16.mxu0 %v1139_v1  ;;  %914 = vmatprep.mubr.msk.f32.mxu0 %vm1140_vm0, %v1141_v2  ;;  %s759_s24 = sld [smem:[#allocation2]]  ;;  %s862_s27 = sshll.u32 %s1187_s2, 4 }
  0x59   : > { %v1318_v3 = vshrl.u32 %v203_v0, 7  ;;  %s200_s5 = scalar_lea.vmem [#allocation8], %s1302_s11  ;;  %s1760_s13 = scalar_lea.hbm %s1807_s3, %s862_s27 }
  0x5a   : > { %s776_s7 = sshll.u32 %s200_s5, 4  ;;  %s764_s18 = scalar_lea.sflag [#allocation5], %s1302_s11  ;;  %s1762_s7 = int_to_ptr.vmem [resolvable:$true] %s776_s7 }
  0x5b   : > { %v222_v4 = vsub.s32 0, %v1318_v3  ;;  %v274_v5 = vsub.s32 1, %v1318_v3  ;;  %v326_v6 = vsub.s32 2, %v1318_v3  ;;  %v378_v7 = vsub.s32 3, %v1318_v3  ;;  %s1062_s4 = scalar_lea.vmem %s1762_s7, 16  ;;  %p1826_p10 = scmp.ne.s32.totalorder %s1815_s25, 0 }
  0x5c   : > { %v430_v8 = vsub.s32 4, %v1318_v3  ;;  %v482_v9 = vsub.s32 5, %v1318_v3  ;;  %v534_v10 = vsub.s32 6, %v1318_v3  ;;  %v586_v11 = vsub.s32 7, %v1318_v3  ;;  %p1063_p9 = scmp.ne.s32.totalorder %s1762_s7, %s1062_s4  ;;  %s1142_s2 = smov [#allocation8]  }
  0x5d   : > { %v1329_v12 = vadd.s32 8, %v1318_v3  ;;  %v1332_v13 = vadd.s32 16, %v1318_v3  ;;  %v1335_v14 = vadd.s32 24, %v1318_v3  ;;  %v1339_v16 = vadd.s32 32, %v1318_v3  ;;  %s1066_s20 = sshll.u32 %s1142_s2, 4  ;;  %s1067_s20 = int_to_ptr.vmem [resolvable:$false] %s1066_s20 }
  0x5e   : > { %v1342_v17 = vadd.s32 40, %v1318_v3  ;;  %v1345_v18 = vadd.s32 48, %v1318_v3  ;;  %v1348_v19 = vadd.s32 56, %v1318_v3  ;;  %v1350_v20 = vrot.slane %v201_v15, %v222_v4  ;;  %p1064_p2 = pnand %p1063_p9, %p1826_p10  ;;  %s1068_s21 = scalar_lea.vmem %s1067_s20, 32 }
  0x5f   : > { %v1352_v21 = vrot.slane %v201_v15, %v274_v5  ;;  %v1354_v22 = vrot.slane %v201_v15, %v326_v6  ;;  %v1356_v23 = vrot.slane %v201_v15, %v378_v7  ;;  %v1358_v24 = vrot.slane %v201_v15, %v430_v8  ;;  %p1069_p5 = scmp.lt.s32.totalorder %s1762_s7, %s1067_s20  ;;  %p1070_p0 = scmp.lt.s32.totalorder %s1068_s21, %s1062_s4 }
  0x60   : > { %v1360_v25 = vrot.slane %v201_v15, %v482_v9  ;;  %v1362_v26 = vrot.slane %v201_v15, %v534_v10  ;;  %v1364_v27 = vrot.slane %v201_v15, %v586_v11  ;;  %vm224_vm1 = vcmp.eq.s32.totalorder %v1350_v20, %v1318_v3  ;;  %p1065_p4 = pneg %p1064_p2 }
  0x61   : > { %vm225_vm2 = vcmp.eq.s32.totalorder %v1350_v20, %v1329_v12  ;;  %vm276_vm3 = vcmp.eq.s32.totalorder %v1352_v21, %v1318_v3  ;;  %vm277_vm4 = vcmp.eq.s32.totalorder %v1352_v21, %v1329_v12  ;;  %v240_v28 = vsel %vm224_vm1, 1.0, %v1141_v2  ;;  %p1071_p6 = por %p1070_p0, %p1069_p5 }
  0x62   : > { %v241_v29 = vsel %vm225_vm2, 1.0, %v1141_v2  ;;  %v292_v30 = vsel %vm276_vm3, 0.2, %v1141_v2  ;;  %v293_v31 = vsel %vm277_vm4, 0.2, %v1141_v2  ;;  %vm328_vm5 = vcmp.eq.s32.totalorder %v1354_v22, %v1318_v3 }
  0x63   : > { %v308_v32 = vadd.f32 %v292_v30, %v240_v28  ;;  %v309_v33 = vadd.f32 %v293_v31, %v241_v29  ;;  %vm329_vm6 = vcmp.eq.s32.totalorder %v1354_v22, %v1329_v12  ;;  %v344_v34 = vsel %vm328_vm5, 0.2, %v1141_v2  ;;  %p1072_p13 = pnand %p1071_p6, %p1065_p4 }
  0x64   : > { %v345_v35 = vsel %vm329_vm6, 0.2, %v1141_v2  ;;  %vm380_vm7 = vcmp.eq.s32.totalorder %v1356_v23, %v1318_v3  ;;  %vm381_vm8 = vcmp.eq.s32.totalorder %v1356_v23, %v1329_v12  ;;  %vm432_vm9 = vcmp.eq.s32.totalorder %v1358_v24, %v1318_v3 }
  0x65   : > { %v360_v36 = vadd.f32 %v344_v34, %v308_v32  ;;  %v361_v37 = vadd.f32 %v345_v35, %v309_v33  ;;  %v396_v38 = vsel %vm380_vm7, 0.2, %v1141_v2  ;;  %v397_v39 = vsel %vm381_vm8, 0.2, %v1141_v2 }
  0x66   : > { %vm433_vm10 = vcmp.eq.s32.totalorder %v1358_v24, %v1329_v12  ;;  %vm484_vm11 = vcmp.eq.s32.totalorder %v1360_v25, %v1318_v3  ;;  %vm485_vm12 = vcmp.eq.s32.totalorder %v1360_v25, %v1329_v12  ;;  %v448_v43 = vsel %vm432_vm9, 0.2, %v1141_v2 }
  0x67   : > { %v412_v41 = vadd.f32 %v396_v38, %v360_v36  ;;  %v413_v42 = vadd.f32 %v397_v39, %v361_v37  ;;  %v449_v44 = vsel %vm433_vm10, 0.2, %v1141_v2  ;;  %v500_v45 = vsel %vm484_vm11, 0.2, %v1141_v2 }
  0x68   : > { %v501_v46 = vsel %vm485_vm12, 0.2, %v1141_v2  ;;  %vm536_vm13 = vcmp.eq.s32.totalorder %v1362_v26, %v1318_v3  ;;  %vm537_vm14 = vcmp.eq.s32.totalorder %v1362_v26, %v1329_v12  ;;  %vm588_vm15 = vcmp.eq.s32.totalorder %v1364_v27, %v1318_v3 }
  0x69   : > { %v464_v47 = vadd.f32 %v448_v43, %v412_v41  ;;  %v465_v48 = vadd.f32 %v449_v44, %v413_v42  ;;  %v552_v49 = vsel %vm536_vm13, 0.33333334, %v1141_v2  ;;  %v553_v50 = vsel %vm537_vm14, 0.33333334, %v1141_v2 }
  0x6a   : > { %vm589_vm0 = vcmp.eq.s32.totalorder %v1364_v27, %v1329_v12  ;;  %vm640_vm1 = vcmp.eq.s32.totalorder %v1399_v40, %v1318_v3  ;;  %vm641_vm2 = vcmp.eq.s32.totalorder %v1399_v40, %v1329_v12  ;;  %v604_v53 = vsel %vm588_vm15, 0.33333334, %v1141_v2 }
  0x6b   : > { %v516_v51 = vadd.f32 %v500_v45, %v464_v47  ;;  %v517_v52 = vadd.f32 %v501_v46, %v465_v48  ;;  %v605_v54 = vsel %vm589_vm0, 0.33333334, %v1141_v2  ;;  %v656_v55 = vsel %vm640_vm1, 0.33333334, %v1141_v2 }
  0x6c   : > { %v657_v56 = vsel %vm641_vm2, 0.33333334, %v1141_v2  ;;  %vm226_vm3 = vcmp.eq.s32.totalorder %v1350_v20, %v1332_v13  ;;  %vm227_vm4 = vcmp.eq.s32.totalorder %v1350_v20, %v1335_v14  ;;  %vm278_vm5 = vcmp.eq.s32.totalorder %v1352_v21, %v1332_v13 }
  0x6d   : > { %v568_v57 = vadd.f32 %v552_v49, %v516_v51  ;;  %v569_v58 = vadd.f32 %v553_v50, %v517_v52  ;;  %v242_v59 = vsel %vm226_vm3, 1.0, %v1141_v2  ;;  %v243_v60 = vsel %vm227_vm4, 1.0, %v1141_v2 }
  0x6e   : > { %vm279_vm6 = vcmp.eq.s32.totalorder %v1352_v21, %v1335_v14  ;;  %vm330_vm7 = vcmp.eq.s32.totalorder %v1354_v22, %v1332_v13  ;;  %vm331_vm8 = vcmp.eq.s32.totalorder %v1354_v22, %v1335_v14  ;;  %v294_v63 = vsel %vm278_vm5, 0.2, %v1141_v2 }
  0x6f   : > { %v620_v61 = vadd.f32 %v604_v53, %v568_v57  ;;  %v621_v62 = vadd.f32 %v605_v54, %v569_v58  ;;  %v295_v0 = vsel %vm279_vm6, 0.2, %v1141_v2  ;;  %v310_v4 = vadd.f32 %v294_v63, %v242_v59 }
  0x70   : > { %v311_v5 = vadd.f32 %v295_v0, %v243_v60  ;;  %v346_v6 = vsel %vm330_vm7, 0.2, %v1141_v2  ;;  %v347_v7 = vsel %vm331_vm8, 0.2, %v1141_v2  ;;  %vm382_vm9 = vcmp.eq.s32.totalorder %v1356_v23, %v1332_v13 }
  0x71   : > { %v672_v8 = vadd.f32 %v656_v55, %v620_v61  ;;  %v673_v9 = vadd.f32 %v657_v56, %v621_v62  ;;  %vm383_vm10 = vcmp.eq.s32.totalorder %v1356_v23, %v1335_v14  ;;  %v362_v10 = vadd.f32 %v346_v6, %v310_v4 }
  0x72   : > { %v363_v11 = vadd.f32 %v347_v7, %v311_v5  ;;  %v398_v12 = vsel %vm382_vm9, 0.2, %v1141_v2  ;;  %v399_v15 = vsel %vm383_vm10, 0.2, %v1141_v2  ;;  %vm434_vm11 = vcmp.eq.s32.totalorder %v1358_v24, %v1332_v13 }
  0x73   : > { %v918_v28 = vpack.c.bf16 %v673_v9, %v672_v8  ;;  %vm435_vm12 = vcmp.eq.s32.totalorder %v1358_v24, %v1335_v14  ;;  %vm486_vm13 = vcmp.eq.s32.totalorder %v1360_v25, %v1332_v13  ;;  %v414_v29 = vadd.f32 %v398_v12, %v362_v10 }
  0x74   : > { %v415_v30 = vadd.f32 %v399_v15, %v363_v11  ;;  %v450_v31 = vsel %vm434_vm11, 0.2, %v1141_v2  ;;  %v451_v32 = vsel %vm435_vm12, 0.2, %v1141_v2  ;;  %vm487_vm14 = vcmp.eq.s32.totalorder %v1360_v25, %v1335_v14 }
  0x75   : > { %919 = vmatpush3.bf16.msra.mxu0 %v918_v28  ;;  %v502_v33 = vsel %vm486_vm13, 0.2, %v1141_v2  ;;  %vm538_vm15 = vcmp.eq.s32.totalorder %v1362_v26, %v1332_v13  ;;  %vm539_vm0 = vcmp.eq.s32.totalorder %v1362_v26, %v1335_v14  ;;  %v466_v34 = vadd.f32 %v450_v31, %v414_v29 }
  0x76   : > { %920 = vmatprep.subr.bf16.mxu0 %v1139_v1  ;;  %v467_v35 = vadd.f32 %v451_v32, %v415_v30  ;;  %v503_v36 = vsel %vm487_vm14, 0.2, %v1141_v2  ;;  %v554_v37 = vsel %vm538_vm15, 0.33333334, %v1141_v2  ;;  %v555_v38 = vsel %vm539_vm0, 0.33333334, %v1141_v2 }
  0x77   : > { %vm590_vm1 = vcmp.eq.s32.totalorder %v1364_v27, %v1332_v13  ;;  %vm591_vm2 = vcmp.eq.s32.totalorder %v1364_v27, %v1335_v14  ;;  %vm642_vm3 = vcmp.eq.s32.totalorder %v1399_v40, %v1332_v13  ;;  %v518_v39 = vadd.f32 %v502_v33, %v466_v34 }
  0x78   : > { %v519_v41 = vadd.f32 %v503_v36, %v467_v35  ;;  %v606_v42 = vsel %vm590_vm1, 0.33333334, %v1141_v2  ;;  %v607_v43 = vsel %vm591_vm2, 0.33333334, %v1141_v2  ;;  %vm643_vm4 = vcmp.eq.s32.totalorder %v1399_v40, %v1335_v14 }
  0x79   : > { %v658_v44 = vsel %vm642_vm3, 0.33333334, %v1141_v2  ;;  %vm228_vm5 = vcmp.eq.s32.totalorder %v1350_v20, %v1339_v16  ;;  %vm229_vm6 = vcmp.eq.s32.totalorder %v1350_v20, %v1342_v17  ;;  %v570_v45 = vadd.f32 %v554_v37, %v518_v39 }
  0x7a   : > { %v571_v46 = vadd.f32 %v555_v38, %v519_v41  ;;  %v659_v13 = vsel %vm643_vm4, 0.33333334, %v1141_v2  ;;  %v244_v47 = vsel %vm228_vm5, 1.0, %v1141_v2  ;;  %v245_v48 = vsel %vm229_vm6, 1.0, %v1141_v2 }
  0x7b   : > { %vm280_vm7 = vcmp.eq.s32.totalorder %v1352_v21, %v1339_v16  ;;  %vm281_vm8 = vcmp.eq.s32.totalorder %v1352_v21, %v1342_v17  ;;  %vm332_vm9 = vcmp.eq.s32.totalorder %v1354_v22, %v1339_v16  ;;  %v622_v14 = vadd.f32 %v606_v42, %v570_v45 }
  0x7c   : > { %v623_v49 = vadd.f32 %v607_v43, %v571_v46  ;;  %v296_v50 = vsel %vm280_vm7, 0.2, %v1141_v2  ;;  %v297_v51 = vsel %vm281_vm8, 0.2, %v1141_v2  ;;  %vm333_vm10 = vcmp.eq.s32.totalorder %v1354_v22, %v1342_v17 }
  0x7d   : > { %v312_v52 = vadd.f32 %v296_v50, %v244_v47  ;;  %v313_v53 = vadd.f32 %v297_v51, %v245_v48  ;;  %v348_v54 = vsel %vm332_vm9, 0.2, %v1141_v2  ;;  %v674_v55 = vadd.f32 %v658_v44, %v622_v14 }
  0x7e   : > { %v675_v56 = vadd.f32 %v659_v13, %v623_v49  ;;  %v349_v57 = vsel %vm333_vm10, 0.2, %v1141_v2  ;;  %vm384_vm11 = vcmp.eq.s32.totalorder %v1356_v23, %v1339_v16  ;;  %vm385_vm12 = vcmp.eq.s32.totalorder %v1356_v23, %v1342_v17 }
  0x7f   : > { %v364_v58 = vadd.f32 %v348_v54, %v312_v52  ;;  %v365_v59 = vadd.f32 %v349_v57, %v313_v53  ;;  %v400_v60 = vsel %vm384_vm11, 0.2, %v1141_v2  ;;  %v401_v62 = vsel %vm385_vm12, 0.2, %v1141_v2 }
  0x80   : > { %v921_v61 = vpack.c.bf16 %v675_v56, %v674_v55  ;;  %vm436_vm13 = vcmp.eq.s32.totalorder %v1358_v24, %v1339_v16  ;;  %vm437_vm14 = vcmp.eq.s32.totalorder %v1358_v24, %v1342_v17  ;;  %vm488_vm15 = vcmp.eq.s32.totalorder %v1360_v25, %v1339_v16 }
  0x81   : > { %v416_v63 = vadd.f32 %v400_v60, %v364_v58  ;;  %v417_v0 = vadd.f32 %v401_v62, %v365_v59  ;;  %v452_v4 = vsel %vm436_vm13, 0.2, %v1141_v2  ;;  %v453_v5 = vsel %vm437_vm14, 0.2, %v1141_v2 }
  0x82   : > { %922 = vmatpush3.bf16.msra.mxu0 %v921_v61  ;;  %vm489_vm0 = vcmp.eq.s32.totalorder %v1360_v25, %v1342_v17  ;;  %vm540_vm1 = vcmp.eq.s32.totalorder %v1362_v26, %v1339_v16  ;;  %vm541_vm2 = vcmp.eq.s32.totalorder %v1362_v26, %v1342_v17  ;;  %v504_v8 = vsel %vm488_vm15, 0.2, %v1141_v2 }
  0x83   : > { %923 = vmatprep.subr.bf16.mxu0 %v1139_v1  ;;  %v468_v6 = vadd.f32 %v452_v4, %v416_v63  ;;  %v469_v7 = vadd.f32 %v453_v5, %v417_v0  ;;  %v505_v9 = vsel %vm489_vm0, 0.2, %v1141_v2  ;;  %v556_v10 = vsel %vm540_vm1, 0.33333334, %v1141_v2 }
  0x84   : > { %v557_v11 = vsel %vm541_vm2, 0.33333334, %v1141_v2  ;;  %vm592_vm3 = vcmp.eq.s32.totalorder %v1364_v27, %v1339_v16  ;;  %vm593_vm4 = vcmp.eq.s32.totalorder %v1364_v27, %v1342_v17  ;;  %vm644_vm5 = vcmp.eq.s32.totalorder %v1399_v40, %v1339_v16 }
  0x85   : > { %v520_v12 = vadd.f32 %v504_v8, %v468_v6  ;;  %v521_v15 = vadd.f32 %v505_v9, %v469_v7  ;;  %v608_v28 = vsel %vm592_vm3, 0.33333334, %v1141_v2  ;;  %v609_v29 = vsel %vm593_vm4, 0.33333334, %v1141_v2 }
  0x86   : > { %vm645_vm6 = vcmp.eq.s32.totalorder %v1399_v40, %v1342_v17  ;;  %vm230_vm7 = vcmp.eq.s32.totalorder %v1350_v20, %v1345_v18  ;;  %vm231_vm8 = vcmp.eq.s32.totalorder %v1350_v20, %v1348_v19  ;;  %v660_v32 = vsel %vm644_vm5, 0.33333334, %v1141_v2 }
  0x87   : > { %v572_v30 = vadd.f32 %v556_v10, %v520_v12  ;;  %v573_v31 = vadd.f32 %v557_v11, %v521_v15  ;;  %v661_v33 = vsel %vm645_vm6, 0.33333334, %v1141_v2  ;;  %v246_v34 = vsel %vm230_vm7, 1.0, %v1141_v2 }
  0x88   : > { %v247_v35 = vsel %vm231_vm8, 1.0, %v1141_v2  ;;  %vm282_vm9 = vcmp.eq.s32.totalorder %v1352_v21, %v1345_v18  ;;  %vm283_vm10 = vcmp.eq.s32.totalorder %v1352_v21, %v1348_v19  ;;  %vm334_vm11 = vcmp.eq.s32.totalorder %v1354_v22, %v1345_v18 }
  0x89   : > { %v624_v16 = vadd.f32 %v608_v28, %v572_v30  ;;  %v625_v17 = vadd.f32 %v609_v29, %v573_v31  ;;  %v298_v36 = vsel %vm282_vm9, 0.2, %v1141_v2  ;;  %v299_v37 = vsel %vm283_vm10, 0.2, %v1141_v2 }
  0x8a   : > { %v314_v38 = vadd.f32 %v298_v36, %v246_v34  ;;  %v315_v39 = vadd.f32 %v299_v37, %v247_v35  ;;  %vm335_vm12 = vcmp.eq.s32.totalorder %v1354_v22, %v1348_v19  ;;  %v350_v43 = vsel %vm334_vm11, 0.2, %v1141_v2 }
  0x8b   : > { %v676_v41 = vadd.f32 %v660_v32, %v624_v16  ;;  %v677_v42 = vadd.f32 %v661_v33, %v625_v17  ;;  %v351_v44 = vsel %vm335_vm12, 0.2, %v1141_v2  ;;  %vm386_vm13 = vcmp.eq.s32.totalorder %v1356_v23, %v1345_v18 }
  0x8c   : > { %v366_v45 = vadd.f32 %v350_v43, %v314_v38  ;;  %v367_v46 = vadd.f32 %v351_v44, %v315_v39  ;;  %vm387_vm14 = vcmp.eq.s32.totalorder %v1356_v23, %v1348_v19  ;;  %v402_v47 = vsel %vm386_vm13, 0.2, %v1141_v2 }
  0x8d   : > { %v924_v13 = vpack.c.bf16 %v677_v42, %v676_v41  ;;  %v403_v48 = vsel %vm387_vm14, 0.2, %v1141_v2  ;;  %vm438_vm15 = vcmp.eq.s32.totalorder %v1358_v24, %v1345_v18  ;;  %vm439_vm0 = vcmp.eq.s32.totalorder %v1358_v24, %v1348_v19 }
  0x8e   : > { %v418_v14 = vadd.f32 %v402_v47, %v366_v45  ;;  %v419_v49 = vadd.f32 %v403_v48, %v367_v46  ;;  %v454_v50 = vsel %vm438_vm15, 0.2, %v1141_v2  ;;  %v455_v51 = vsel %vm439_vm0, 0.2, %v1141_v2 }
  0x8f   : > { %925 = vmatpush3.bf16.msra.mxu0 %v924_v13  ;;  %vm490_vm1 = vcmp.eq.s32.totalorder %v1360_v25, %v1345_v18  ;;  %vm491_vm2 = vcmp.eq.s32.totalorder %v1360_v25, %v1348_v19  ;;  %vm542_vm3 = vcmp.eq.s32.totalorder %v1362_v26, %v1345_v18  ;;  %vm543_vm4 = vcmp.eq.s32.totalorder %v1362_v26, %v1348_v19 }
  0x90   : > { %926 = vmatprep.subr.bf16.mxu0 %v1139_v1  ;;  %v470_v52 = vadd.f32 %v454_v50, %v418_v14  ;;  %v471_v53 = vadd.f32 %v455_v51, %v419_v49  ;;  %v506_v54 = vsel %vm490_vm1, 0.2, %v1141_v2  ;;  %v507_v55 = vsel %vm491_vm2, 0.2, %v1141_v2 }
  0x91   : > { %v558_v56 = vsel %vm542_vm3, 0.33333334, %v1141_v2  ;;  %vm594_vm5 = vcmp.eq.s32.totalorder %v1364_v27, %v1345_v18  ;;  %vm595_vm6 = vcmp.eq.s32.totalorder %v1364_v27, %v1348_v19  ;;  %v559_v59 = vsel %vm543_vm4, 0.33333334, %v1141_v2 }
  0x92   : > { %v522_v57 = vadd.f32 %v506_v54, %v470_v52  ;;  %v523_v58 = vadd.f32 %v507_v55, %v471_v53  ;;  %v610_v60 = vsel %vm594_vm5, 0.33333334, %v1141_v2  ;;  %v611_v61 = vsel %vm595_vm6, 0.33333334, %v1141_v2 }
  0x93   : > { %vm646_vm7 = vcmp.eq.s32.totalorder %v1399_v40, %v1345_v18  ;;  %vm647_vm8 = vcmp.eq.s32.totalorder %v1399_v40, %v1348_v19  ;;  %v212_v62 = vadd.s32 64, %v1318_v3  ;;  %v213_v6 = vadd.s32 72, %v1318_v3 }
  0x94   : > { %v574_v63 = vadd.f32 %v558_v56, %v522_v57  ;;  %v575_v0 = vadd.f32 %v559_v59, %v523_v58  ;;  %v662_v4 = vsel %vm646_vm7, 0.33333334, %v1141_v2  ;;  %v663_v5 = vsel %vm647_vm8, 0.33333334, %v1141_v2 }
  0x95   : > { %vm232_vm9 = vcmp.eq.s32.totalorder %v1350_v20, %v212_v62  ;;  %vm284_vm10 = vcmp.eq.s32.totalorder %v1352_v21, %v212_v62  ;;  %vm336_vm11 = vcmp.eq.s32.totalorder %v1354_v22, %v212_v62  ;;  %vm233_vm12 = vcmp.eq.s32.totalorder %v1350_v20, %v213_v6 }
  0x96   : > { %v626_v18 = vadd.f32 %v610_v60, %v574_v63  ;;  %v627_v7 = vadd.f32 %v611_v61, %v575_v0  ;;  %v248_v19 = vsel %vm232_vm9, 1.0, %v1141_v2  ;;  %v300_v8 = vsel %vm284_vm10, 0.2, %v1141_v2 }
  0x97   : > { %vm285_vm13 = vcmp.eq.s32.totalorder %v1352_v21, %v213_v6  ;;  %v316_v9 = vadd.f32 %v300_v8, %v248_v19  ;;  %vm337_vm14 = vcmp.eq.s32.totalorder %v1354_v22, %v213_v6  ;;  %v249_v12 = vsel %vm233_vm12, 1.0, %v1141_v2 }
  0x98   : > { %v678_v10 = vadd.f32 %v662_v4, %v626_v18  ;;  %v679_v11 = vadd.f32 %v663_v5, %v627_v7  ;;  %v301_v15 = vsel %vm285_vm13, 0.2, %v1141_v2  ;;  %v352_v29 = vsel %vm336_vm11, 0.2, %v1141_v2 }
  0x99   : > { %v317_v28 = vadd.f32 %v301_v15, %v249_v12  ;;  %v353_v30 = vsel %vm337_vm14, 0.2, %v1141_v2  ;;  %vm388_vm15 = vcmp.eq.s32.totalorder %v1356_v23, %v212_v62  ;;  %v368_v32 = vadd.f32 %v352_v29, %v316_v9 }
  0x9a   : > { %v927_v31 = vpack.c.bf16 %v679_v11, %v678_v10  ;;  %vm389_vm0 = vcmp.eq.s32.totalorder %v1356_v23, %v213_v6  ;;  %v404_v33 = vsel %vm388_vm15, 0.2, %v1141_v2  ;;  %vm440_vm1 = vcmp.eq.s32.totalorder %v1358_v24, %v212_v62 }
  0x9b   : > { %v369_v34 = vadd.f32 %v353_v30, %v317_v28  ;;  %v405_v35 = vsel %vm389_vm0, 0.2, %v1141_v2  ;;  %vm441_vm2 = vcmp.eq.s32.totalorder %v1358_v24, %v213_v6  ;;  %v420_v16 = vadd.f32 %v404_v33, %v368_v32 }
  0x9c   : > { %928 = vmatpush3.bf16.msra.mxu0 %v927_v31  ;;  %v456_v17 = vsel %vm440_vm1, 0.2, %v1141_v2  ;;  %v457_v36 = vsel %vm441_vm2, 0.2, %v1141_v2  ;;  %vm492_vm3 = vcmp.eq.s32.totalorder %v1360_v25, %v212_v62  ;;  %vm493_vm4 = vcmp.eq.s32.totalorder %v1360_v25, %v213_v6 }
  0x9d   : > { %929 = vmatprep.subr.bf16.mxu0 %v1139_v1  ;;  %v421_v37 = vadd.f32 %v405_v35, %v369_v34  ;;  %v508_v38 = vsel %vm492_vm3, 0.2, %v1141_v2  ;;  %vm544_vm5 = vcmp.eq.s32.totalorder %v1362_v26, %v212_v62  ;;  %v472_v39 = vadd.f32 %v456_v17, %v420_v16 }
  0x9e   : > { %v509_v41 = vsel %vm493_vm4, 0.2, %v1141_v2  ;;  %vm545_vm6 = vcmp.eq.s32.totalorder %v1362_v26, %v213_v6  ;;  %v560_v42 = vsel %vm544_vm5, 0.33333334, %v1141_v2  ;;  %vm596_vm7 = vcmp.eq.s32.totalorder %v1364_v27, %v212_v62 }
  0x9f   : > { %v473_v43 = vadd.f32 %v457_v36, %v421_v37  ;;  %v561_v44 = vsel %vm545_vm6, 0.33333334, %v1141_v2  ;;  %vm597_vm8 = vcmp.eq.s32.totalorder %v1364_v27, %v213_v6  ;;  %v524_v45 = vadd.f32 %v508_v38, %v472_v39 }
  0xa0   : > { %v612_v46 = vsel %vm596_vm7, 0.33333334, %v1141_v2  ;;  %v613_v13 = vsel %vm597_vm8, 0.33333334, %v1141_v2  ;;  %vm648_vm9 = vcmp.eq.s32.totalorder %v1399_v40, %v212_v62  ;;  %vm649_vm10 = vcmp.eq.s32.totalorder %v1399_v40, %v213_v6 }
  0xa1   : > { %v525_v47 = vadd.f32 %v509_v41, %v473_v43  ;;  %v664_v48 = vsel %vm648_vm9, 0.33333334, %v1141_v2  ;;  %v214_v14 = vadd.s32 80, %v1318_v3  ;;  %v576_v49 = vadd.f32 %v560_v42, %v524_v45 }
  0xa2   : > { %v665_v50 = vsel %vm649_vm10, 0.33333334, %v1141_v2  ;;  %v215_v51 = vadd.s32 88, %v1318_v3  ;;  %v1630_v52 = vadd.s32 96, %v1318_v3  ;;  %v217_v16 = vadd.s32 104, %v1318_v3 }
  0xa3   : > { %v577_v53 = vadd.f32 %v561_v44, %v525_v47  ;;  %vm234_vm11 = vcmp.eq.s32.totalorder %v1350_v20, %v214_v14  ;;  %vm286_vm12 = vcmp.eq.s32.totalorder %v1352_v21, %v214_v14  ;;  %vm338_vm13 = vcmp.eq.s32.totalorder %v1354_v22, %v214_v14 }
  0xa4   : > { %v628_v54 = vadd.f32 %v612_v46, %v576_v49  ;;  %vm235_vm14 = vcmp.eq.s32.totalorder %v1350_v20, %v215_v51  ;;  %v250_v55 = vsel %vm234_vm11, 1.0, %v1141_v2  ;;  %vm287_vm15 = vcmp.eq.s32.totalorder %v1352_v21, %v215_v51 }
  0xa5   : > { %v629_v56 = vadd.f32 %v613_v13, %v577_v53  ;;  %v251_v57 = vsel %vm235_vm14, 1.0, %v1141_v2  ;;  %v302_v58 = vsel %vm286_vm12, 0.2, %v1141_v2  ;;  %v303_v59 = vsel %vm287_vm15, 0.2, %v1141_v2 }
  0xa6   : > { %v680_v60 = vadd.f32 %v664_v48, %v628_v54  ;;  %v318_v61 = vadd.f32 %v302_v58, %v250_v55  ;;  %v319_v62 = vadd.f32 %v303_v59, %v251_v57  ;;  %vm339_vm0 = vcmp.eq.s32.totalorder %v1354_v22, %v215_v51 }
  0xa7   : > { %v681_v63 = vadd.f32 %v665_v50, %v629_v56  ;;  %v354_v0 = vsel %vm338_vm13, 0.2, %v1141_v2  ;;  %v355_v4 = vsel %vm339_vm0, 0.2, %v1141_v2  ;;  %vm390_vm1 = vcmp.eq.s32.totalorder %v1356_v23, %v214_v14 }
  0xa8   : > { %v370_v5 = vadd.f32 %v354_v0, %v318_v61  ;;  %v371_v6 = vadd.f32 %v355_v4, %v319_v62  ;;  %vm391_vm2 = vcmp.eq.s32.totalorder %v1356_v23, %v215_v51  ;;  %v406_v18 = vsel %vm390_vm1, 0.2, %v1141_v2 }
  0xa9   : > { %v930_v7 = vpack.c.bf16 %v681_v63, %v680_v60  ;;  %v407_v19 = vsel %vm391_vm2, 0.2, %v1141_v2  ;;  %vm442_vm3 = vcmp.eq.s32.totalorder %v1358_v24, %v214_v14  ;;  %vm443_vm4 = vcmp.eq.s32.totalorder %v1358_v24, %v215_v51 }
  0xaa   : > { %v422_v8 = vadd.f32 %v406_v18, %v370_v5  ;;  %v423_v9 = vadd.f32 %v407_v19, %v371_v6  ;;  %v458_v10 = vsel %vm442_vm3, 0.2, %v1141_v2  ;;  %v459_v11 = vsel %vm443_vm4, 0.2, %v1141_v2 }
  0xab   : > { %931 = vmatpush3.bf16.msra.mxu0 %v930_v7  ;;  %vm494_vm5 = vcmp.eq.s32.totalorder %v1360_v25, %v214_v14  ;;  %vm495_vm6 = vcmp.eq.s32.totalorder %v1360_v25, %v215_v51  ;;  %vm546_vm7 = vcmp.eq.s32.totalorder %v1362_v26, %v214_v14  ;;  %vm547_vm8 = vcmp.eq.s32.totalorder %v1362_v26, %v215_v51 }
  0xac   : > { %932 = vmatprep.subr.bf16.mxu0 %v1139_v1  ;;  %v474_v12 = vadd.f32 %v458_v10, %v422_v8  ;;  %v475_v15 = vadd.f32 %v459_v11, %v423_v9  ;;  %v510_v28 = vsel %vm494_vm5, 0.2, %v1141_v2  ;;  %v511_v29 = vsel %vm495_vm6, 0.2, %v1141_v2 }
  0xad   : > { %v562_v30 = vsel %vm546_vm7, 0.33333334, %v1141_v2  ;;  %v563_v31 = vsel %vm547_vm8, 0.33333334, %v1141_v2  ;;  %vm598_vm9 = vcmp.eq.s32.totalorder %v1364_v27, %v214_v14  ;;  %vm599_vm10 = vcmp.eq.s32.totalorder %v1364_v27, %v215_v51 }
  0xae   : > { %v526_v32 = vadd.f32 %v510_v28, %v474_v12  ;;  %v527_v33 = vadd.f32 %v511_v29, %v475_v15  ;;  %v614_v34 = vsel %vm598_vm9, 0.33333334, %v1141_v2  ;;  %v615_v35 = vsel %vm599_vm10, 0.33333334, %v1141_v2 }
  0xaf   : > { %vm650_vm11 = vcmp.eq.s32.totalorder %v1399_v40, %v214_v14  ;;  %vm651_vm12 = vcmp.eq.s32.totalorder %v1399_v40, %v215_v51  ;;  %vm236_vm13 = vcmp.eq.s32.totalorder %v1350_v20, %v1630_v52  ;;  %vm237_vm14 = vcmp.eq.s32.totalorder %v1350_v20, %v217_v16 }
  0xb0   : > { %v578_v17 = vadd.f32 %v562_v30, %v526_v32  ;;  %v579_v36 = vadd.f32 %v563_v31, %v527_v33  ;;  %v666_v37 = vsel %vm650_vm11, 0.33333334, %v1141_v2  ;;  %v667_v38 = vsel %vm651_vm12, 0.33333334, %v1141_v2 }
  0xb1   : > { %v252_v39 = vsel %vm236_vm13, 1.0, %v1141_v2  ;;  %vm288_vm15 = vcmp.eq.s32.totalorder %v1352_v21, %v1630_v52  ;;  %vm289_vm0 = vcmp.eq.s32.totalorder %v1352_v21, %v217_v16  ;;  %v253_v43 = vsel %vm237_vm14, 1.0, %v1141_v2 }
  0xb2   : > { %v630_v41 = vadd.f32 %v614_v34, %v578_v17  ;;  %v631_v42 = vadd.f32 %v615_v35, %v579_v36  ;;  %v304_v44 = vsel %vm288_vm15, 0.2, %v1141_v2  ;;  %v305_v45 = vsel %vm289_vm0, 0.2, %v1141_v2 }
  0xb3   : > { %v320_v46 = vadd.f32 %v304_v44, %v252_v39  ;;  %vm340_vm1 = vcmp.eq.s32.totalorder %v1354_v22, %v1630_v52  ;;  %vm341_vm2 = vcmp.eq.s32.totalorder %v1354_v22, %v217_v16  ;;  %v321_v48 = vadd.f32 %v305_v45, %v253_v43 }
  0xb4   : > { %v682_v13 = vadd.f32 %v666_v37, %v630_v41  ;;  %v683_v47 = vadd.f32 %v667_v38, %v631_v42  ;;  %v356_v14 = vsel %vm340_vm1, 0.2, %v1141_v2  ;;  %v357_v49 = vsel %vm341_vm2, 0.2, %v1141_v2 }
  0xb5   : > { %v372_v50 = vadd.f32 %v356_v14, %v320_v46  ;;  %vm392_vm3 = vcmp.eq.s32.totalorder %v1356_v23, %v1630_v52  ;;  %vm393_vm4 = vcmp.eq.s32.totalorder %v1356_v23, %v217_v16  ;;  %v373_v53 = vadd.f32 %v357_v49, %v321_v48 }
  0xb6   : > { %v933_v51 = vpack.c.bf16 %v683_v47, %v682_v13  ;;  %v408_v54 = vsel %vm392_vm3, 0.2, %v1141_v2  ;;  %v409_v55 = vsel %vm393_vm4, 0.2, %v1141_v2  ;;  %vm444_vm5 = vcmp.eq.s32.totalorder %v1358_v24, %v1630_v52 }
  0xb7   : > { %v424_v56 = vadd.f32 %v408_v54, %v372_v50  ;;  %vm445_vm6 = vcmp.eq.s32.totalorder %v1358_v24, %v217_v16  ;;  %vm496_vm7 = vcmp.eq.s32.totalorder %v1360_v25, %v1630_v52  ;;  %v425_v57 = vadd.f32 %v409_v55, %v373_v53  ;;  %v688_v54 = vld [vmem:[#allocation6] sm:$0xff] }
  0xb8   : > { %934 = vmatpush3.bf16.msra.mxu0 %v933_v51  ;;  %v460_v58 = vsel %vm444_vm5, 0.2, %v1141_v2  ;;  %v461_v59 = vsel %vm445_vm6, 0.2, %v1141_v2  ;;  %vm497_vm8 = vcmp.eq.s32.totalorder %v1360_v25, %v217_v16  ;;  %v512_v61 = vsel %vm496_vm7, 0.2, %v1141_v2 }
  0xb9   : > { %935 = vmatprep.subr.bf16.mxu0 %v1139_v1  ;;  %v476_v60 = vadd.f32 %v460_v58, %v424_v56  ;;  %v513_v62 = vsel %vm497_vm8, 0.2, %v1141_v2  ;;  %vm548_vm9 = vcmp.eq.s32.totalorder %v1362_v26, %v1630_v52  ;;  %v477_v63 = vadd.f32 %v461_v59, %v425_v57 }
  0xba   : > { %vm549_vm10 = vcmp.eq.s32.totalorder %v1362_v26, %v217_v16  ;;  %v564_v0 = vsel %vm548_vm9, 0.33333334, %v1141_v2  ;;  %vm600_vm11 = vcmp.eq.s32.totalorder %v1364_v27, %v1630_v52  ;;  %vm601_vm12 = vcmp.eq.s32.totalorder %v1364_v27, %v217_v16 }
  0xbb   : > { %v528_v4 = vadd.f32 %v512_v61, %v476_v60  ;;  %v565_v5 = vsel %vm549_vm10, 0.33333334, %v1141_v2  ;;  %v529_v6 = vadd.f32 %v513_v62, %v477_v63  ;;  %v616_v18 = vsel %vm600_vm11, 0.33333334, %v1141_v2 }
  0xbc   : > { %vm652_vm13 = vcmp.eq.s32.totalorder %v1399_v40, %v1630_v52  ;;  %vm653_vm14 = vcmp.eq.s32.totalorder %v1399_v40, %v217_v16  ;;  %v617_v19 = vsel %vm601_vm12, 0.33333334, %v1141_v2  ;;  %v218_v8 = vadd.s32 112, %v1318_v3 }
  0xbd   : > { %v580_v7 = vadd.f32 %v564_v0, %v528_v4  ;;  %v581_v9 = vadd.f32 %v565_v5, %v529_v6  ;;  %v668_v10 = vsel %vm652_vm13, 0.33333334, %v1141_v2  ;;  %v669_v11 = vsel %vm653_vm14, 0.33333334, %v1141_v2 }
  0xbe   : > { %v219_v12 = vadd.s32 120, %v1318_v3  ;;  %vm238_vm15 = vcmp.eq.s32.totalorder %v1350_v20, %v218_v8  ;;  %vm290_vm0 = vcmp.eq.s32.totalorder %v1352_v21, %v218_v8  ;;  %vm342_vm1 = vcmp.eq.s32.totalorder %v1354_v22, %v218_v8 }
  0xbf   : > { %v632_v15 = vadd.f32 %v616_v18, %v580_v7  ;;  %v633_v52 = vadd.f32 %v617_v19, %v581_v9  ;;  %v254_v28 = vsel %vm238_vm15, 1.0, %v1141_v2  ;;  %v306_v31 = vsel %vm290_vm0, 0.2, %v1141_v2 }
  0xc0   : > { %vm239_vm2 = vcmp.eq.s32.totalorder %v1350_v20, %v219_v12  ;;  %vm291_vm3 = vcmp.eq.s32.totalorder %v1352_v21, %v219_v12  ;;  %v322_v33 = vadd.f32 %v306_v31, %v254_v28  ;;  %vm343_vm4 = vcmp.eq.s32.totalorder %v1354_v22, %v219_v12 }
  0xc1   : > { %v684_v29 = vadd.f32 %v668_v10, %v632_v15  ;;  %v255_v30 = vsel %vm239_vm2, 1.0, %v1141_v2  ;;  %v307_v3 = vsel %vm291_vm3, 0.2, %v1141_v2  ;;  %v685_v32 = vadd.f32 %v669_v11, %v633_v52 }
  0xc2   : > { %v323_v34 = vadd.f32 %v307_v3, %v255_v30  ;;  %v358_v35 = vsel %vm342_vm1, 0.2, %v1141_v2  ;;  %v359_v20 = vsel %vm343_vm4, 0.2, %v1141_v2  ;;  %vm394_vm5 = vcmp.eq.s32.totalorder %v1356_v23, %v218_v8 }
  0xc3   : > { %vm395_vm6 = vcmp.eq.s32.totalorder %v1356_v23, %v219_v12  ;;  %v936_v21 = vpack.c.bf16 %v685_v32, %v684_v29  ;;  %v374_v16 = vadd.f32 %v358_v35, %v322_v33  ;;  %v410_v36 = vsel %vm394_vm5, 0.2, %v1141_v2 }
  0xc4   : > { %v375_v17 = vadd.f32 %v359_v20, %v323_v34  ;;  %v411_v37 = vsel %vm395_vm6, 0.2, %v1141_v2  ;;  %vm446_vm7 = vcmp.eq.s32.totalorder %v1358_v24, %v218_v8  ;;  %vm447_vm8 = vcmp.eq.s32.totalorder %v1358_v24, %v219_v12 }
  0xc5   : > { %vm498_vm9 = vcmp.eq.s32.totalorder %v1360_v25, %v218_v8  ;;  %937 = vmatpush3.bf16.msra.mxu0 %v936_v21  ;;  %v426_v22 = vadd.f32 %v410_v36, %v374_v16  ;;  %v462_v39 = vsel %vm446_vm7, 0.2, %v1141_v2  ;;  %v463_v23 = vsel %vm447_vm8, 0.2, %v1141_v2 }
  0xc6   : > { %v427_v38 = vadd.f32 %v411_v37, %v375_v17  ;;  %938 = vmatprep.subr.bf16.mxu0 %v1139_v1  ;;  %vm499_vm10 = vcmp.eq.s32.totalorder %v1360_v25, %v219_v12  ;;  %v514_v41 = vsel %vm498_vm9, 0.2, %v1141_v2  ;;  %vm550_vm11 = vcmp.eq.s32.totalorder %v1362_v26, %v218_v8 }
  0xc7   : > { %vm551_vm12 = vcmp.eq.s32.totalorder %v1362_v26, %v219_v12  ;;  %v478_v24 = vadd.f32 %v462_v39, %v426_v22  ;;  %v515_v43 = vsel %vm499_vm10, 0.2, %v1141_v2  ;;  %v566_v44 = vsel %vm550_vm11, 0.33333334, %v1141_v2 }
  0xc8   : > { %v479_v42 = vadd.f32 %v463_v23, %v427_v38  ;;  %v567_v45 = vsel %vm551_vm12, 0.33333334, %v1141_v2  ;;  %vm602_vm13 = vcmp.eq.s32.totalorder %v1364_v27, %v218_v8  ;;  %vm603_vm14 = vcmp.eq.s32.totalorder %v1364_v27, %v219_v12 }
  0xc9   : > { %v530_v1 = vadd.f32 %v514_v41, %v478_v24  ;;  %vm654_vm15 = vcmp.eq.s32.totalorder %v1399_v40, %v218_v8  ;;  %v618_v46 = vsel %vm602_vm13, 0.33333334, %v1141_v2  ;;  %v619_v26 = vsel %vm603_vm14, 0.33333334, %v1141_v2 }
  0xca   : > { %v531_v25 = vadd.f32 %v515_v43, %v479_v42  ;;  %vm655_vm0 = vcmp.eq.s32.totalorder %v1399_v40, %v219_v12  ;;  %v670_v48 = vsel %vm654_vm15, 0.33333334, %v1141_v2  ;;  %v760_v55 = vstv %s759_s24 }
  0xcb   : > { %v582_v13 = vadd.f32 %v566_v44, %v530_v1  ;;  %v671_v14 = vsel %vm655_vm0, 0.33333334, %v1141_v2 }
  0xcc   : > { %v583_v47 = vadd.f32 %v567_v45, %v531_v25 }
  0xcd   : > { %v634_v49 = vadd.f32 %v618_v46, %v582_v13 }
  0xce   : > { %v635_v27 = vadd.f32 %v619_v26, %v583_v47 }
  0xcf   : > { %v686_v50 = vadd.f32 %v670_v48, %v634_v49 }
  0xd0   : > { %v687_v51 = vadd.f32 %v671_v14, %v635_v27 }
  0xd2   : > { %v939_v53 = vpack.c.bf16 %v687_v51, %v686_v50 }
  0xd4   : > { %940 = vmatpush3.bf16.msra.mxu0 %v939_v53 }
  0xd7   : > { %915 = vmatmul.mubr.f32.vlgmr.msra.gmra.mrb[0].mxu0 %v688_v54 }
 0x1aa   : > { %v755_v40 = vpop.f32.mrb[0].mxu0 }
 0x1ab   : > { %v761_v56 = vadd.f32 %v760_v55, %v755_v40  ;;  %v916_v57 = vpop.f32.mrb[1].mxu0 }
 0x1ad   : > { %762 = vst [vmem:[%s200_s5] sm:$0x1] %v761_v56 }
 0x1ae   : > { %1075 = shalt.err (!%p1072_p13)
}
 0x1af   : > { %s1076_s23 = scalar_lea.hbm %s1760_s13, 16  ;;  %s1080_s9 = scalar_lea.hbm %s1807_s3, 32 }
 0x1b0   : > { %p1077_p7 = scmp.ne.s32.totalorder %s1760_s13, %s1076_s23  ;;  %p1081_p1 = scmp.lt.u32.totalorder %s1760_s13, %s1807_s3 }
 0x1b1   : > { %p1082_p11 = scmp.lt.u32.totalorder %s1080_s9, %s1076_s23  ;;  %p1084_p9 = scmp.lt.u32.totalorder %s1076_s23, %s1760_s13 }
 0x1b2   : > { %p1078_p3 = pnand %p1077_p7, %p1826_p10 }
 0x1b3   : > { %p1083_p8 = por %p1082_p11, %p1081_p1 }
 0x1b4   : > { %p1079_p12 = pneg %p1078_p3 }
 0x1b5   : > { %p1085_p2 = por %p1084_p9, %p1083_p8 }
 0x1b7   : > { %p1086_p4 = pnand %p1085_p2, %p1079_p12 }
 0x1b9   : > { %1089 = shalt.err (!%p1086_p4)
}
 0x1ba   : > { %947 = dma.vmem_to_hbm [thread:$0]  (%p1826_p10), %s1762_s7, 16, %s1760_s13, %s764_s18  }
 0x1bb PF: > { %s788_s6 = sand.u32 1, %s1120_s14   ;;  %p1827_p5 = scmp.ne.s32.totalorder %s1816_s26, 0 }
 0x1bc   : > { %p1828_p0 = scmp.ge.s32.totalorder %s1132_s17, 2  ;;  %s789_s12 = scalar_lea.sflag [#allocation5], %s788_s6 }
 0x1be   : > { %p958_p6 = pnand %p1828_p0, %p1827_p5 }
 0x1c0   : > { %1115 = dma.done.wait (!%p958_p6), %s789_s12, 16  }
 0x1c1   : > { %1117 = vsyncadd (!%p958_p6), %s789_s12, 4294967280  ;;  %p18_p13 = scmp.ge.s32.totalorder %s1191_s19, 4   ;;  %s1829_s14 = smov %s1124_s15 }
 0x1c2   : > { %s1830_s15 = smov %s1128_s16  ;;  %s1831_s16 = smov %s1203_s22 }
 0x1c3   : > { %s1832_s17 = smov %s1191_s19  ;;  %20 = sbr.rel (!%p18_p13) target bundleno = 8 (0x8), region = 81 }
 0x1ca   :  { %793 = vsyncpa [#allocation4], 1 }
 0x1cb   :  { %795 = vsyncpa [#allocation4 + $0x1], 1 }
 0x1cc   :  { %796 = vsyncpa [#allocation7], 1 }
 0x1cd   :  { %797 = vsyncpa [#allocation5], 1 }
 0x1ce   :  { %799 = vsyncpa [#allocation5 + $0x1], 1 }

</bundles_post_ra>
